<compile_context>
chip_gen: v5e
topology: v5e:2x2
jax: 0.10.0
libtpu: 0.0.40
codegen_flags: <defaults>
</compile_context>

<pallas_src>
import functools

import jax
import jax.numpy as jnp
from jax.experimental import pallas as pl
from jax.experimental.pallas import tpu as pltpu

_LANE = 128


def _round_up(x: int, m: int) -> int:
    return ((x + m - 1) // m) * m


def _encoder_kernel(x_ref, w_ref, b_ref, o_ref):
    """One (tile_b, tile_n) output tile: GELU(x @ W + b), full contraction in one dot.

    x_ref: (tile_b, D)      f32  (cast to bf16 in-kernel for the MXU)
    w_ref: (D, tile_n)      bf16 (lane-dense, zero-padded columns)
    b_ref: (1, tile_n)      f32
    o_ref: (tile_b, tile_n) f32
    """
    x = x_ref[...].astype(jnp.bfloat16)
    y = jnp.dot(x, w_ref[...], preferred_element_type=jnp.float32) + b_ref[...]
    inv_sqrt2 = 0.7071067811865476
    o_ref[...] = 0.5 * y * (1.0 + jax.lax.erf(y * inv_sqrt2))


def prepare_encoder_params(weight_pt, bias, *, compute_dtype=jnp.bfloat16):
    """One-time (init) parameter prep.

    weight_pt: (latent_dim, input_dim)  -- PyTorch nn.Linear layout
    bias:      (latent_dim,)
    Returns (W (D, Lp) compute_dtype, b (1, Lp) f32, latent_dim).
    Only the output (lane) dim is padded to a multiple of 128 so stores are unmasked;
    padded columns are sliced away after the kernel. Transpose/cast/pad happen once.
    """
    weight_pt = jnp.asarray(weight_pt)
    bias = jnp.asarray(bias)
    L, D = weight_pt.shape
    Lp = _round_up(L, _LANE)
    w = jnp.zeros((D, Lp), compute_dtype).at[:, :L].set(weight_pt.T.astype(compute_dtype))
    b = jnp.zeros((1, Lp), jnp.float32).at[0, :L].set(bias.astype(jnp.float32))
    return w, b, int(L)


def _pick_tile_n(Lp: int) -> int:
    # Largest lane-dense tile that exactly divides Lp (Lp is a multiple of 128).
    for cand in (1024, 512, 256, 128):
        if cand <= Lp and Lp % cand == 0:
            return cand
    return _LANE


def _pick_tile_b(B: int, D: int, tile_n: int, budget_bytes: int) -> int:
    if B < 8:
        return B  # full-extent block (legal: equals the array dim)
    # Double-buffered VMEM cost: W + bias are fixed; x (f32) + out (f32) scale per row.
    fixed = 2 * (D * tile_n * 2 + tile_n * 4)
    per_row = 2 * (D * 4 + tile_n * 4)
    max_rows = max((budget_bytes - fixed) // per_row, 8)
    chosen = 8
    for cand in (1024, 512, 256, 128, 64, 32, 16, 8):
        if cand > max_rows or cand > B:
            continue
        chosen = max(chosen, cand)
        waste = _round_up(B, cand) - B
        if waste <= max(B // 8, 8):  # bound ragged-batch padding waste
            return cand
    return chosen


@functools.partial(jax.jit, static_argnames=("latent_dim",))
def encoder_forward(x, w_prepped, b_prepped, *, latent_dim):
    """Pallas forward of _Encoder: GELU(x @ W + b).

    x: (B, input_dim), any dtype (module casts to float). Returns (B, latent_dim) f32.
    """
    x = jnp.asarray(x).astype(jnp.float32)  # module semantics: cast to float
    B, D = x.shape
    Dw, Lp = w_prepped.shape
    assert Dw == D, "weight/input feature mismatch"

    tile_n = _pick_tile_n(Lp)
    nl = Lp // tile_n
    # ~28 MiB tile budget keeps the kernel comfortable inside v7x's 64 MiB VMEM.
    # TODO(synk): for extreme input_dim (weight panel alone > VMEM) a K-tiled
    # accumulator variant would be needed; not expected for this dim-reduction encoder.
    tile_b = _pick_tile_b(B, D, tile_n, budget_bytes=28 << 20)
    nb = pl.cdiv(B, tile_b)

    # Grid ordering: the operand whose block index is constant along the inner axis is
    # fetched only when the outer index changes. With nl == 1 (typical latent dims) the
    # weight index is constant everywhere -> DMA'd exactly once.
    if nl > 1 and (D * Lp * 2) * nb > (B * D * 4) * nl:
        grid = (nl, nb)  # L outer, batch inner: W fetched once per L tile
        x_map = lambda j, i: (i, 0)
        w_map = lambda j, i: (0, j)
        b_map = lambda j, i: (0, j)
        o_map = lambda j, i: (i, j)
    else:
        grid = (nb, nl)  # batch outer; with nl == 1, W fetched once total
        x_map = lambda i, j: (i, 0)
        w_map = lambda i, j: (0, j)
        b_map = lambda i, j: (0, j)
        o_map = lambda i, j: (i, j)

    # Explicit VMEM limit from the actual double-buffered footprint (+ headroom).
    footprint = 2 * (tile_b * D * 4 + D * tile_n * 2 + tile_n * 4 + tile_b * tile_n * 4)
    vmem_limit = int(min(max(footprint + (4 << 20), 16 << 20), 100 << 20))

    out = pl.pallas_call(
        _encoder_kernel,
        out_shape=jax.ShapeDtypeStruct((B, Lp), jnp.float32),
        grid_spec=pltpu.PrefetchScalarGridSpec(
            num_scalar_prefetch=0,
            grid=grid,
            in_specs=[
                pl.BlockSpec((tile_b, D), x_map),   # x: unpadded; ragged rows masked
                pl.BlockSpec((D, tile_n), w_map),   # W: VMEM-resident across batch tiles
                pl.BlockSpec((1, tile_n), b_map),
            ],
            out_specs=pl.BlockSpec((tile_b, tile_n), o_map),
        ),
        compiler_params=pltpu.CompilerParams(
            dimension_semantics=("parallel", "parallel"),
            vmem_limit_bytes=vmem_limit,
        ),
    )(x, w_prepped, b_prepped)

    return out if latent_dim == Lp else out[:, :latent_dim]


def _reference(x, weight_pt, bias):
    x = jnp.asarray(x, jnp.float32)
    y = x @ jnp.asarray(weight_pt, jnp.float32).T + jnp.asarray(bias, jnp.float32)
    return 0.5 * y * (1.0 + jax.lax.erf(y * jnp.float32(0.7071067811865476)))


if __name__ == "__main__":
    # Small shapes consistent with the module: Linear(input_dim -> latent_dim) + GELU.
    batch, input_dim, latent_dim = 8, 64, 32

    key = jax.random.PRNGKey(0)
    kx, kw, kb = jax.random.split(key, 3)

    x = jax.random.normal(kx, (batch, input_dim), dtype=jnp.float32)
    # Deterministic nn.Linear-style init bound.
    bound = 1.0 / (input_dim ** 0.5)
    weight_pt = jax.random.uniform(kw, (latent_dim, input_dim), jnp.float32, -bound, bound)
    bias = jax.random.uniform(kb, (latent_dim,), jnp.float32, -bound, bound)

    # One-time parameter prep (transpose / cast / pad) outside the hot path.
    w_p, b_p, L = prepare_encoder_params(weight_pt, bias)

    out = encoder_forward(x, w_p, b_p, latent_dim=L)
    out = jax.block_until_ready(out)

    ref = _reference(x, weight_pt, bias)
    assert out.shape == (batch, latent_dim)
    # bf16 MXU operands (f32 accumulate) -> relaxed tolerance vs the f32 reference.
    assert jnp.allclose(out, ref, atol=3e-2, rtol=3e-2), "mismatch vs reference"

    print("KERNEL_OK")
</pallas_src>

<mosaic_0001>
module attributes {stable_mosaic.version = 11 : i64} {
  func.func @_encoder_kernel(%arg0: i32, %arg1: i32, %arg2: memref<8x64xf32, #tpu.memory_space<vmem>>, %arg3: memref<64x128xbf16, #tpu.memory_space<vmem>>, %arg4: memref<1x128xf32, #tpu.memory_space<vmem>>, %arg5: memref<8x128xf32, #tpu.memory_space<vmem>>) attributes {dimension_semantics = [#tpu.dimension_semantics<parallel>, #tpu.dimension_semantics<parallel>], iteration_bounds = array<i64: 1, 1>, scalar_prefetch = 0 : i64, scratch_operands = 0 : i64, tpu.core_type = #tpu.core_type<tc>, window_params = [{transform_indices = @transform_0, window_bounds = array<i64: 8, 64>}, {transform_indices = @transform_1, window_bounds = array<i64: 64, 128>}, {transform_indices = @transform_2, window_bounds = array<i64: 1, 128>}, {transform_indices = @transform_3, window_bounds = array<i64: 8, 128>}]} {
    %c0 = arith.constant 0 : index
    %c0_0 = arith.constant 0 : index
    %0 = vector.load %arg2[%c0, %c0_0] : memref<8x64xf32, #tpu.memory_space<vmem>>, vector<8x64xf32>
    %1 = arith.truncf %0 : vector<8x64xf32> to vector<8x64xbf16>
    %c0_1 = arith.constant 0 : index
    %c0_2 = arith.constant 0 : index
    %2 = vector.load %arg3[%c0_1, %c0_2] : memref<64x128xbf16, #tpu.memory_space<vmem>>, vector<64x128xbf16>
    %cst = arith.constant dense<0.000000e+00> : vector<8x128xf32>
    %3 = tpu.matmul %1, %2, %cst {dimension_numbers = #tpu.dot_dimension_numbers<[1], [0], [0], [1], [0, 0, 1, 1], [], []>} : vector<8x64xbf16>, vector<64x128xbf16>, vector<8x128xf32> -> vector<8x128xf32>
    %c0_3 = arith.constant 0 : index
    %c0_4 = arith.constant 0 : index
    %4 = vector.load %arg4[%c0_3, %c0_4] : memref<1x128xf32, #tpu.memory_space<vmem>>, vector<1x128xf32>
    %5 = vector.broadcast %4 : vector<1x128xf32> to vector<8x128xf32>
    %6 = arith.addf %3, %5 : vector<8x128xf32>
    %cst_5 = arith.constant 5.000000e-01 : f32
    %7 = vector.broadcast %cst_5 : f32 to vector<8x128xf32>
    %8 = arith.mulf %7, %6 : vector<8x128xf32>
    %cst_6 = arith.constant 0.707106769 : f32
    %9 = vector.broadcast %cst_6 : f32 to vector<8x128xf32>
    %10 = arith.mulf %6, %9 : vector<8x128xf32>
    %11 = math.erf %10 : vector<8x128xf32>
    %cst_7 = arith.constant 1.000000e+00 : f32
    %12 = vector.broadcast %cst_7 : f32 to vector<8x128xf32>
    %13 = arith.addf %12, %11 : vector<8x128xf32>
    %14 = arith.mulf %8, %13 : vector<8x128xf32>
    %c0_8 = arith.constant 0 : index
    %c0_9 = arith.constant 0 : index
    %15 = vector.load %arg5[%c0_8, %c0_9] : memref<8x128xf32, #tpu.memory_space<vmem>>, vector<8x128xf32>
    tpu.vector_store %arg5[%c0_8, %c0_9], %14 {strides = array<i32>} : memref<8x128xf32, #tpu.memory_space<vmem>>, vector<8x128xf32>,
    return
  }
  func.func @transform_0(%arg0: i32, %arg1: i32) -> (i32, i32) {
    %c0_i32 = arith.constant 0 : i32
    %c0_i32_0 = arith.constant 0 : i32
    return %arg0, %c0_i32 : i32, i32
  }
  func.func @transform_1(%arg0: i32, %arg1: i32) -> (i32, i32) {
    %c0_i32 = arith.constant 0 : i32
    %c0_i32_0 = arith.constant 0 : i32
    return %c0_i32, %arg1 : i32, i32
  }
  func.func @transform_2(%arg0: i32, %arg1: i32) -> (i32, i32) {
    %c0_i32 = arith.constant 0 : i32
    %c0_i32_0 = arith.constant 0 : i32
    return %c0_i32, %arg1 : i32, i32
  }
  func.func @transform_3(%arg0: i32, %arg1: i32) -> (i32, i32) {
    %c0_i32 = arith.constant 0 : i32
    return %arg0, %arg1 : i32, i32
  }
}

</mosaic_0001>

<bundles_post_ra>
// kernel: encoder_forward.1
= control target key start
LH: loop header
LB: loop body
LE: loop exit
PB: predicated region body
PF: predicated region fallthrough
CT: control target
= control target key end

     0   :  { %8 = vsyncpa [#allocation3], 0  ;;  %s309_s0 = inlined_call_operand.hbm [shape: f32[8,64], index: 0, kind: input, shape index: {}]   ;;  %s310_s1 = inlined_call_operand.hbm [shape: bf16[64,128], index: 1, kind: input, shape index: {}]   ;;  %s311_s2 = inlined_call_operand.vmem [shape: f32[1,128], index: 2, kind: input, shape index: {}]   ;;  %s312_s3 = inlined_call_operand.hbm [shape: f32[8,128], index: 3, kind: output, shape index: {}]  }
   0x1   :  { %9 = vsyncpa [#allocation6], 0 }
   0x2   :  { %10 = vsyncpa [#allocation4], 0  ;;  %s16_s14 = sshll.u32 %s309_s0, 4  ;;  %s272_s15 = smov [#allocation2]   ;;  %s17_s14 = int_to_ptr.hbm [resolvable:$true] %s16_s14 }
   0x3   :  { %s18_s16 = sshll.u32 %s272_s15, 4  ;;  %s26_s19 = sshll.u32 %s310_s1, 4  ;;  %s19_s16 = int_to_ptr.vmem [resolvable:$true] %s18_s16  ;;  %s27_s19 = int_to_ptr.hbm [resolvable:$true] %s26_s19 }
   0x4   :  { %21 = dma.hbm_to_vmem [thread:$0]  %s17_s14, 128, %s19_s16, [#allocation3]  }
   0x5   :  { %s273_s20 = smov [#allocation5]   ;;  %s274_s22 = smov 64  }
   0x6   :  { %s28_s21 = sshll.u32 %s273_s20, 4  ;;  %s275_s23 = smov 4   ;;  %s29_s21 = int_to_ptr.vmem [resolvable:$true] %s28_s21 }
   0x7   :  { %34 = dma.hbm_to_vmem [thread:$0]  %s27_s19, 512, %s29_s21, [#allocation6], %s274_s22, %s274_s22, %s275_s23  }
   0x8   :  { %266 = dma.done.wait [#allocation3], 128  }
   0x9   :  { %267 = vsyncadd [#allocation3], 4294967168 }
   0xa   :  { %268 = dma.done.wait [#allocation6], 512  }
   0xb   :  { %269 = vsyncadd [#allocation6], 4294966784  ;;  %v185_v0 = vld [vmem:[#allocation5 + $0x18] sm:$0xff]  ;;  %v184_v1 = vld [vmem:[#allocation5 + $0x10] sm:$0xff]  ;;  %vm84_vm0 = vcmask 523264   ;;  %s153_s27 = sshll.u32 %s312_s3, 4  ;;  %s154_s27 = int_to_ptr.hbm [resolvable:$true] %s153_s27 }
   0xc   :  { %92 = vmatpush.bf16.msra.mxu0 %v185_v0  ;;  %v183_v2 = vld [vmem:[#allocation5 + $0x8] sm:$0xff]  ;;  %v182_v3 = vld [vmem:[#allocation5] sm:$0xff]  ;;  %v46_v4 = vld [vmem:[#allocation2] sm:$0xff] }
   0xd   :  { %v47_v5 = vpack.c.bf16 %v46_v4, %v46_v4  ;;  %v191_v6 = vld [vmem:[%s311_s2] ss:$0 sm:$0xff]  ;;  %s276_s2 = smov [#allocation7]  }
   0xe   :  { %s151_s24 = sshll.u32 %s276_s2, 4  ;;  %s152_s24 = int_to_ptr.vmem [resolvable:$true] %s151_s24 }
  0x10   :  { %93 = vmatpush.bf16.msra.mxu0 %v184_v1 }
  0x14   :  { %94 = vmatpush.bf16.msra.mxu0 %v183_v2 }
  0x18   :  { %95 = vmatpush.bf16.msra.mxu0 %v182_v3 }
  0x1b   :  { %180 = vmatmul.msk.bf16.vlgmr.msra.gmra.mxu0 %vm84_vm0, %v47_v5 }
  0x98   :  { %v97_v7 = vpop.f32.mrf.mxu0 }
  0x99   :  { %v98_v8 = vadd.f32 %v191_v6, %v97_v7 }
  0x9b   :  { %v102_v9 = vmul.f32 0.70710677, %v98_v8  ;;  %v101_v46 = vmul.f32 0.5, %v98_v8 }
  0x9d   :  { %v103_v10 = vmul.f32 %v102_v9, %v102_v9 }
  0x9f   :  { %v104_v11 = vmin.f32 %v103_v10, 16.0 }
  0xa0   :  { %v99_v12 = vpop.f32.mrf.mxu0 }
  0xa1   :  { %v105_v13 = vmul.f32 2.1237322e-06, %v104_v11  ;;  %v116_v14 = vmul.f32 3.8918573e-05, %v104_v11 }
  0xa3   :  { %v106_v15 = vadd.f32 0.00028619796, %v105_v13  ;;  %v117_v16 = vadd.f32 0.001143296, %v116_v14 }
  0xa5   :  { %v107_v17 = vmul.f32 %v106_v15, %v104_v11  ;;  %v118_v18 = vmul.f32 %v117_v16, %v104_v11 }
  0xa7   :  { %v119_v19 = vadd.f32 0.014752088, %v118_v18  ;;  %v108_v20 = vadd.f32 0.0036580483, %v107_v17 }
  0xa9   :  { %v120_v21 = vmul.f32 %v119_v19, %v104_v11  ;;  %v109_v23 = vmul.f32 %v108_v20, %v104_v11 }
  0xab   :  { %v121_v22 = vadd.f32 0.112945676, %v120_v21  ;;  %v110_v26 = vadd.f32 0.05243302, %v109_v23 }
  0xad   :  { %v122_v24 = vmul.f32 %v121_v22, %v104_v11  ;;  %v111_v29 = vmul.f32 %v110_v26, %v104_v11 }
  0xaf   :  { %v123_v25 = vadd.f32 0.4994258, %v122_v24  ;;  %v112_v30 = vadd.f32 0.18741608, %v111_v29 }
  0xb1   :  { %v124_v27 = vmul.f32 %v123_v25, %v104_v11  ;;  %v113_v32 = vmul.f32 %v112_v30, %v104_v11 }
  0xb3   :  { %v125_v28 = vadd.f32 1.0, %v124_v27  ;;  %v114_v36 = vadd.f32 1.1283791, %v113_v32 }
  0xb5   :  { %192 = vrcp.f32 %v125_v28  ;;  %v137_v35 = vand.u32 2147483648, %v125_v28  ;;  %v135_v38 = vand.u32 2147483647, %v125_v28  ;;  %vm131_vm2 = vweird.f32 %v125_v28 }
  0xb6   :  { %v115_v41 = vmul.f32 %v114_v36, %v102_v9 }
  0xb7   :  { %v138_v40 = vor.u32 1.1754944e-38, %v137_v35  ;;  %vm136_vm4 = vcmp.eq.f32.partialorder %v135_v38, 8.507059e+37 }
  0xbb   :  { %v193_v31 = vpop.eup %192 }
  0xbc   :  { %v127_v33 = vmul.f32 %v193_v31, %v125_v28  ;;  %vm132_vm1 = vweird.f32 %v193_v31 }
  0xbd   :  { %vm133_vm3 = vmor %vm131_vm2, %vm132_vm1 }
  0xbe   :  { %v128_v34 = vsub.f32 1.0, %v127_v33 }
  0xc0   :  { %v129_v37 = vmul.f32 %v193_v31, %v128_v34 }
  0xc2   :  { %v130_v39 = vadd.f32 %v193_v31, %v129_v37 }
  0xc4   :  { %v134_v42 = vsel %vm133_vm3, %v193_v31, %v130_v39 }
  0xc5   :  { %v139_v43 = vsel %vm136_vm4, %v138_v40, %v134_v42 }
  0xc6   :  { %v140_v44 = vmul.f32 %v139_v43, %v115_v41 }
  0xc8   :  { %v181_v45 = vclamps-f32 %v140_v44, 1.0 }
  0xca   :  { %v143_v47 = vadd.f32 1.0, %v181_v45 }
  0xcc   :  { %v144_v48 = vmul.f32 %v143_v47, %v101_v46 }
  0xce   :  { %145 = vst [vmem:[#allocation7] sm:$0xff] %v144_v48 }
  0xcf   :  { %156 = dma.vmem_to_hbm [thread:$0]  %s152_s24, 128, %s154_s27, [#allocation4]  }
  0xd0   :  { %270 = dma.done.wait [#allocation4], 128  }
  0xd1   :  { %271 = vsyncadd [#allocation4], 4294967168 }
  0xd2   :  { %161 = vsyncpa [#allocation3], 1 }
  0xd3   :  { %162 = vsyncpa [#allocation6], 1 }
  0xd4   :  { %163 = vsyncpa [#allocation4], 1 }

</bundles_post_ra>
